<compile_context>
chip_gen: v5e
topology: v5e:2x2
jax: 0.10.0
libtpu: 0.0.40
codegen_flags: <defaults>
</compile_context>

<pallas_src>
import jax
import jax.numpy as jnp
from jax.experimental import pallas as pl
from jax.experimental.pallas import tpu as pltpu


def _round_up(n: int, m: int) -> int:
    return (n + m - 1) // m * m


def mlp_kernel(x_ref, w1_ref, b1_ref, w2_ref, b2_ref, w3_ref, b3_ref, o_ref):
    # All math in f32: MXU matmuls with f32 accumulation, elementwise
    # (bias, ReLU, sigmoid) on VPU/EUP in f32 (safe on v5e as well).
    x = x_ref[...]                                                  # (tb, in_dim)
    h1 = jnp.dot(x, w1_ref[...], preferred_element_type=jnp.float32) + b1_ref[...]
    h1 = jnp.maximum(h1, 0.0)
    h2 = jnp.dot(h1, w2_ref[...], preferred_element_type=jnp.float32) + b2_ref[...]
    h2 = jnp.maximum(h2, 0.0)
    z = jnp.dot(h2, w3_ref[...], preferred_element_type=jnp.float32) + b3_ref[...]
    o_ref[...] = jax.nn.sigmoid(z)                                  # (tb, out_dim)


def simple_dense_net(x, w1, b1, w2, b2, w3, b3, *, batch_tile=1024):
    """x: (B, in_dim) f32; weights (in, out) f32; biases (1, out) f32."""
    B, in_dim = x.shape
    hid = w1.shape[1]
    out_dim = w3.shape[1]

    # Batch tile: up to `batch_tile` rows (amortizes the ~0.35us per-grid-step
    # overhead; mem-bound roofline saturates around 1024-row tiles).  Must be
    # a multiple of 8 sublanes.  For large batches keep >= 2 grid steps so
    # both TensorCores get work on v7x.  Per-step VMEM footprint is well under
    # 1 MiB, far below the scoped default on every generation (incl. v7x).
    tb = min(batch_tile, _round_up(B, 8))
    if B >= 1024 and pl.cdiv(B, tb) < 2:
        tb = _round_up(pl.cdiv(B, 2), 8)
    grid = (pl.cdiv(B, tb),)  # partial last block instead of padding B up

    def rep(shape):
        # Resident weight/bias blocks: same block every grid step.
        # (Could be single-buffered via pipeline_mode=pl.Buffered(1); the
        # ~100 KiB VMEM saving is negligible here, so defaults are kept.)
        return pl.BlockSpec(shape, lambda i: (0, 0))

    out = pl.pallas_call(
        mlp_kernel,
        out_shape=jax.ShapeDtypeStruct((B, out_dim), jnp.float32),
        grid_spec=pltpu.PrefetchScalarGridSpec(
            num_scalar_prefetch=0,
            grid=grid,
            in_specs=[
                pl.BlockSpec((tb, in_dim), lambda i: (i, 0)),  # x tile
                rep((in_dim, hid)),                            # w1
                rep((1, hid)),                                 # b1
                rep((hid, hid)),                               # w2
                rep((1, hid)),                                 # b2
                rep((hid, out_dim)),                           # w3
                rep((1, out_dim)),                             # b3
            ],
            out_specs=pl.BlockSpec((tb, out_dim), lambda i: (i, 0)),
        ),
        compiler_params=pltpu.CompilerParams(
            # batch axis is independent -> shard across TensorCores on v7x
            dimension_semantics=("parallel",),
        ),
    )(x, w1, b1, w2, b2, w3, b3)
    return out


def init_linear(key, in_features, out_features):
    """PyTorch nn.Linear default init: U(-1/sqrt(in), 1/sqrt(in)); W stored as (in, out)."""
    kw, kb = jax.random.split(key)
    bound = 1.0 / jnp.sqrt(jnp.float32(in_features))
    w = jax.random.uniform(kw, (in_features, out_features), jnp.float32, -bound, bound)
    b = jax.random.uniform(kb, (1, out_features), jnp.float32, -bound, bound)
    return w, b


def ref_forward(x, w1, b1, w2, b2, w3, b3):
    h1 = jnp.maximum(x @ w1 + b1, 0.0)
    h2 = jnp.maximum(h1 @ w2 + b2, 0.0)
    return jax.nn.sigmoid(h2 @ w3 + b3)


if __name__ == "__main__":
    input_dim, hidden_dim, output_dim = 32, 64, 1

    key = jax.random.PRNGKey(0)
    kx, k1, k2, k3, kx2, kx3 = jax.random.split(key, 6)

    w1, b1 = init_linear(k1, input_dim, hidden_dim)
    w2, b2 = init_linear(k2, hidden_dim, hidden_dim)
    w3, b3 = init_linear(k3, hidden_dim, output_dim)

    # Small batch: single grid step, full blocks.
    x = jax.random.normal(kx, (8, input_dim), jnp.float32)
    out = jax.block_until_ready(simple_dense_net(x, w1, b1, w2, b2, w3, b3))
    assert out.shape == (8, output_dim)
    assert jnp.allclose(out, ref_forward(x, w1, b1, w2, b2, w3, b3), atol=2e-2), \
        "mismatch vs f32 reference (small batch)"

    # Non-divisible batch with a small tile: multi-step grid + partial tail block.
    x2 = jax.random.normal(kx2, (300, input_dim), jnp.float32)
    out2 = jax.block_until_ready(
        simple_dense_net(x2, w1, b1, w2, b2, w3, b3, batch_tile=128))
    assert out2.shape == (300, output_dim)
    assert jnp.allclose(out2, ref_forward(x2, w1, b1, w2, b2, w3, b3), atol=2e-2), \
        "mismatch vs f32 reference (partial tail block)"

    # Larger batch on the default (1024-row) tile path; grid has >= 2 steps.
    x3 = jax.random.normal(kx3, (2048, input_dim), jnp.float32)
    out3 = jax.block_until_ready(simple_dense_net(x3, w1, b1, w2, b2, w3, b3))
    assert out3.shape == (2048, output_dim)
    assert jnp.allclose(out3, ref_forward(x3, w1, b1, w2, b2, w3, b3), atol=2e-2), \
        "mismatch vs f32 reference (large batch)"

    print("KERNEL_OK")
</pallas_src>

<mosaic_0001>
module attributes {stable_mosaic.version = 11 : i64} {
  func.func @mlp_kernel(%arg0: i32, %arg1: memref<8x32xf32, #tpu.memory_space<vmem>>, %arg2: memref<32x64xf32, #tpu.memory_space<vmem>>, %arg3: memref<1x64xf32, #tpu.memory_space<vmem>>, %arg4: memref<64x64xf32, #tpu.memory_space<vmem>>, %arg5: memref<1x64xf32, #tpu.memory_space<vmem>>, %arg6: memref<64x1xf32, #tpu.memory_space<vmem>>, %arg7: memref<1x1xf32, #tpu.memory_space<vmem>>, %arg8: memref<8x1xf32, #tpu.memory_space<vmem>>) attributes {dimension_semantics = [#tpu.dimension_semantics<parallel>], iteration_bounds = array<i64: 1>, scalar_prefetch = 0 : i64, scratch_operands = 0 : i64, tpu.core_type = #tpu.core_type<tc>, window_params = [{transform_indices = @transform_0, window_bounds = array<i64: 8, 32>}, {pipeline_mode = #tpu.pipeline_mode<synchronous>, transform_indices = @transform_1, window_bounds = array<i64: 32, 64>}, {pipeline_mode = #tpu.pipeline_mode<synchronous>, transform_indices = @transform_2, window_bounds = array<i64: 1, 64>}, {pipeline_mode = #tpu.pipeline_mode<synchronous>, transform_indices = @transform_3, window_bounds = array<i64: 64, 64>}, {pipeline_mode = #tpu.pipeline_mode<synchronous>, transform_indices = @transform_4, window_bounds = array<i64: 1, 64>}, {pipeline_mode = #tpu.pipeline_mode<synchronous>, transform_indices = @transform_5, window_bounds = array<i64: 64, 1>}, {pipeline_mode = #tpu.pipeline_mode<synchronous>, transform_indices = @transform_6, window_bounds = array<i64: 1, 1>}, {transform_indices = @transform_7, window_bounds = array<i64: 8, 1>}]} {
    %c0 = arith.constant 0 : index
    %c0_0 = arith.constant 0 : index
    %0 = vector.load %arg1[%c0, %c0_0] : memref<8x32xf32, #tpu.memory_space<vmem>>, vector<8x32xf32>
    %c0_1 = arith.constant 0 : index
    %c0_2 = arith.constant 0 : index
    %1 = vector.load %arg2[%c0_1, %c0_2] : memref<32x64xf32, #tpu.memory_space<vmem>>, vector<32x64xf32>
    %cst = arith.constant dense<0.000000e+00> : vector<8x64xf32>
    %2 = tpu.matmul %0, %1, %cst {dimension_numbers = #tpu.dot_dimension_numbers<[1], [0], [0], [1], [0, 0, 1, 1], [], []>} : vector<8x32xf32>, vector<32x64xf32>, vector<8x64xf32> -> vector<8x64xf32>
    %c0_3 = arith.constant 0 : index
    %c0_4 = arith.constant 0 : index
    %3 = vector.load %arg3[%c0_3, %c0_4] : memref<1x64xf32, #tpu.memory_space<vmem>>, vector<1x64xf32>
    %4 = vector.broadcast %3 : vector<1x64xf32> to vector<8x64xf32>
    %5 = arith.addf %2, %4 : vector<8x64xf32>
    %cst_5 = arith.constant 0.000000e+00 : f32
    %6 = vector.broadcast %cst_5 : f32 to vector<8x64xf32>
    %7 = arith.maximumf %5, %6 : vector<8x64xf32>
    %c0_6 = arith.constant 0 : index
    %c0_7 = arith.constant 0 : index
    %8 = vector.load %arg4[%c0_6, %c0_7] : memref<64x64xf32, #tpu.memory_space<vmem>>, vector<64x64xf32>
    %cst_8 = arith.constant dense<0.000000e+00> : vector<8x64xf32>
    %9 = tpu.matmul %7, %8, %cst_8 {dimension_numbers = #tpu.dot_dimension_numbers<[1], [0], [0], [1], [0, 0, 1, 1], [], []>} : vector<8x64xf32>, vector<64x64xf32>, vector<8x64xf32> -> vector<8x64xf32>
    %c0_9 = arith.constant 0 : index
    %c0_10 = arith.constant 0 : index
    %10 = vector.load %arg5[%c0_9, %c0_10] : memref<1x64xf32, #tpu.memory_space<vmem>>, vector<1x64xf32>
    %11 = vector.broadcast %10 : vector<1x64xf32> to vector<8x64xf32>
    %12 = arith.addf %9, %11 : vector<8x64xf32>
    %cst_11 = arith.constant 0.000000e+00 : f32
    %13 = vector.broadcast %cst_11 : f32 to vector<8x64xf32>
    %14 = arith.maximumf %12, %13 : vector<8x64xf32>
    %c0_12 = arith.constant 0 : index
    %c0_13 = arith.constant 0 : index
    %15 = vector.load %arg6[%c0_12, %c0_13] : memref<64x1xf32, #tpu.memory_space<vmem>>, vector<64x1xf32>
    %cst_14 = arith.constant dense<0.000000e+00> : vector<8x1xf32>
    %16 = tpu.matmul %14, %15, %cst_14 {dimension_numbers = #tpu.dot_dimension_numbers<[1], [0], [0], [1], [0, 0, 1, 1], [], []>} : vector<8x64xf32>, vector<64x1xf32>, vector<8x1xf32> -> vector<8x1xf32>
    %c0_15 = arith.constant 0 : index
    %c0_16 = arith.constant 0 : index
    %17 = vector.load %arg7[%c0_15, %c0_16] : memref<1x1xf32, #tpu.memory_space<vmem>>, vector<1x1xf32>
    %18 = vector.broadcast %17 : vector<1x1xf32> to vector<8x1xf32>
    %19 = arith.addf %16, %18 : vector<8x1xf32>
    %20 = arith.negf %19 : vector<8x1xf32>
    %21 = math.exp %20 : vector<8x1xf32>
    %cst_17 = arith.constant 1.000000e+00 : f32
    %22 = vector.broadcast %cst_17 : f32 to vector<8x1xf32>
    %23 = arith.addf %22, %21 : vector<8x1xf32>
    %24 = arith.divf %22, %23 : vector<8x1xf32>
    %c0_18 = arith.constant 0 : index
    %c0_19 = arith.constant 0 : index
    %25 = vector.load %arg8[%c0_18, %c0_19] : memref<8x1xf32, #tpu.memory_space<vmem>>, vector<8x1xf32>
    tpu.vector_store %arg8[%c0_18, %c0_19], %24 {strides = array<i32>} : memref<8x1xf32, #tpu.memory_space<vmem>>, vector<8x1xf32>,
    return
  }
  func.func @transform_0(%arg0: i32) -> (i32, i32) {
    %c0_i32 = arith.constant 0 : i32
    %c0_i32_0 = arith.constant 0 : i32
    return %arg0, %c0_i32 : i32, i32
  }
  func.func @transform_1(%arg0: i32) -> (i32, i32) {
    %c0_i32 = arith.constant 0 : i32
    %c0_i32_0 = arith.constant 0 : i32
    %c0_i32_1 = arith.constant 0 : i32
    return %c0_i32, %c0_i32_0 : i32, i32
  }
  func.func @transform_2(%arg0: i32) -> (i32, i32) {
    %c0_i32 = arith.constant 0 : i32
    %c0_i32_0 = arith.constant 0 : i32
    %c0_i32_1 = arith.constant 0 : i32
    return %c0_i32, %c0_i32_0 : i32, i32
  }
  func.func @transform_3(%arg0: i32) -> (i32, i32) {
    %c0_i32 = arith.constant 0 : i32
    %c0_i32_0 = arith.constant 0 : i32
    %c0_i32_1 = arith.constant 0 : i32
    return %c0_i32, %c0_i32_0 : i32, i32
  }
  func.func @transform_4(%arg0: i32) -> (i32, i32) {
    %c0_i32 = arith.constant 0 : i32
    %c0_i32_0 = arith.constant 0 : i32
    %c0_i32_1 = arith.constant 0 : i32
    return %c0_i32, %c0_i32_0 : i32, i32
  }
  func.func @transform_5(%arg0: i32) -> (i32, i32) {
    %c0_i32 = arith.constant 0 : i32
    %c0_i32_0 = arith.constant 0 : i32
    %c0_i32_1 = arith.constant 0 : i32
    return %c0_i32, %c0_i32_0 : i32, i32
  }
  func.func @transform_6(%arg0: i32) -> (i32, i32) {
    %c0_i32 = arith.constant 0 : i32
    %c0_i32_0 = arith.constant 0 : i32
    %c0_i32_1 = arith.constant 0 : i32
    return %c0_i32, %c0_i32_0 : i32, i32
  }
  func.func @transform_7(%arg0: i32) -> (i32, i32) {
    %c0_i32 = arith.constant 0 : i32
    %c0_i32_0 = arith.constant 0 : i32
    return %arg0, %c0_i32 : i32, i32
  }
}

</mosaic_0001>

<bundles_post_ra>
// kernel: tpu_custom_call.1
= control target key start
LH: loop header
LB: loop body
LE: loop exit
PB: predicated region body
PF: predicated region fallthrough
CT: control target
= control target key end

     0   :  { %s368_s0 = inlined_call_operand.hbm [shape: f32[8,32], index: 0, kind: input, shape index: {}]   ;;  %s369_s1 = inlined_call_operand.hbm [shape: f32[32,64], index: 1, kind: input, shape index: {}]   ;;  %s370_s2 = inlined_call_operand.vmem [shape: f32[1,64], index: 2, kind: input, shape index: {}]   ;;  %s371_s3 = inlined_call_operand.vmem [shape: f32[64,64], index: 3, kind: input, shape index: {}]   ;;  %s372_s4 = inlined_call_operand.vmem [shape: f32[1,64], index: 4, kind: input, shape index: {}]   ;;  %s373_s5 = inlined_call_operand.vmem [shape: f32[64,1], index: 5, kind: input, shape index: {}]   ;;  %s374_s6 = inlined_call_operand.<no memory space> [shape: f32[1,1], index: 6, kind: input, shape index: {}]   ;;  %s375_s7 = inlined_call_operand.vmem [shape: f32[8,1], index: 7, kind: output, shape index: {}]  }
   0x1   :  { %v12_v0 = vstv %s374_s6 }
   0x2   :  { %13 = vst [vmem:[#allocation2] sm:$0x1] %v12_v0 }
   0x3   :  { %14 = vsyncpa [#allocation4], 0  ;;  %s21_s28 = sshll.u32 %s368_s0, 4  ;;  %s22_s28 = int_to_ptr.hbm [resolvable:$true] %s21_s28 }
   0x4   :  { %15 = vsyncpa [#allocation6], 0  ;;  %s258_s29 = smov [#allocation3]   ;;  %s31_s10 = sshll.u32 %s369_s1, 4  ;;  %s32_s10 = int_to_ptr.hbm [resolvable:$true] %s31_s10 }
   0x5   :  { %s23_s30 = sshll.u32 %s258_s29, 4  ;;  %s259_s11 = smov [#allocation5]   ;;  %s24_s30 = int_to_ptr.vmem [resolvable:$true] %s23_s30 }
   0x6   :  { %26 = dma.hbm_to_vmem [thread:$0]  %s22_s28, 128, %s24_s30, [#allocation4]  }
   0x7   :  { %s33_s12 = sshll.u32 %s259_s11, 4  ;;  %s260_s6 = smov 128   ;;  %s34_s12 = int_to_ptr.vmem [resolvable:$true] %s33_s12 }
   0x8   :  { %s261_s13 = smov 8  }
   0x9   :  { %39 = dma.hbm_to_vmem [thread:$0]  %s32_s10, 512, %s34_s12, [#allocation6], %s260_s6, %s260_s6, %s261_s13  }
   0xa   :  { %254 = dma.done.wait [#allocation4], 128  }
   0xb   :  { %255 = vsyncadd [#allocation4], 4294967168 }
   0xc   :  { %256 = dma.done.wait [#allocation6], 512  }
   0xd   :  { %257 = vsyncadd [#allocation6], 4294966784  ;;  %v62_v1 = vld [vmem:[#allocation5 + $0x18] sm:$0xff]  ;;  %v61_v2 = vld [vmem:[#allocation5 + $0x10] sm:$0xff]  ;;  %vm67_vm0 = vcmask 261120   ;;  %vm104_vm1 = vcmask 523264  }
   0xe   :  { %83 = vmatpush.msra.mxu0 %v62_v1  ;;  %v99_v3 = vld [vmem:[%s371_s3 + $0x38] sm:$0xff]  ;;  %v98_v5 = vld [vmem:[%s371_s3 + $0x30] sm:$0xff]  ;;  %v97_v6 = vld [vmem:[%s371_s3 + $0x28] sm:$0xff]  ;;  %vm183_vm5 = vcmask 7168  }
   0xf   :  { %v60_v4 = vld [vmem:[#allocation5 + $0x8] sm:$0xff]  ;;  %116 = vmatpush.msra.mxu1 %v99_v3  ;;  %v59_v7 = vld [vmem:[#allocation5] sm:$0xff]  ;;  %v58_v8 = vld [vmem:[#allocation3] sm:$0xff] }
  0x10   :  { %84 = vmatpush.msra.mxu0 %v61_v2  ;;  %v96_v9 = vld [vmem:[%s371_s3 + $0x20] sm:$0xff]  ;;  %v95_v10 = vld [vmem:[%s371_s3 + $0x18] sm:$0xff]  ;;  %v94_v11 = vld [vmem:[%s371_s3 + $0x10] sm:$0xff] }
  0x11   :  { %117 = vmatpush.msra.mxu1 %v98_v5  ;;  %v93_v12 = vld [vmem:[%s371_s3 + $0x8] sm:$0xff]  ;;  %v92_v13 = vld [vmem:[%s371_s3] sm:$0xff]  ;;  %v136_v14 = vld [vmem:[%s373_s5 + $0x38] sm:$0xff] }
  0x12   :  { %85 = vmatpush.msra.mxu0 %v60_v4  ;;  %v135_v15 = vld [vmem:[%s373_s5 + $0x30] sm:$0xff]  ;;  %152 = vmatpush.msra.mxu2 %v136_v14  ;;  %v134_v16 = vld [vmem:[%s373_s5 + $0x28] sm:$0xff]  ;;  %v133_v17 = vld [vmem:[%s373_s5 + $0x20] sm:$0xff] }
  0x13   :  { %118 = vmatpush.msra.mxu1 %v97_v6  ;;  %v132_v18 = vld [vmem:[%s373_s5 + $0x18] sm:$0xff]  ;;  %v199_v19 = vld [vmem:[%s370_s2] ss:$0 sm:$0xff]  ;;  %v131_v23 = vld [vmem:[%s373_s5 + $0x10] sm:$0xff] }
  0x14   :  { %86 = vmatpush.msra.mxu0 %v59_v7  ;;  %153 = vmatpush.msra.mxu2 %v135_v15  ;;  %v130_v24 = vld [vmem:[%s373_s5 + $0x8] sm:$0xff]  ;;  %v129_v25 = vld [vmem:[%s373_s5] sm:$0xff] }
  0x15   :  { %191 = vmatmul.msk.f32.vlgmr.msra.gmra.mxu0 %vm67_vm0, %v58_v8  ;;  %119 = vmatpush.msra.mxu1 %v96_v9  ;;  %v200_v26 = vld [vmem:[%s372_s4] ss:$0 sm:$0xff] }
  0x16   :  { %154 = vmatpush.msra.mxu2 %v134_v16  ;;  %v201_v30 = vld [vmem:[#allocation2] ss:$0 sm:$0xff] }
  0x17   :  { %120 = vmatpush.msra.mxu1 %v95_v10 }
  0x18   :  { %155 = vmatpush.msra.mxu2 %v133_v17 }
  0x19   :  { %121 = vmatpush.msra.mxu1 %v94_v11 }
  0x1a   :  { %156 = vmatpush.msra.mxu2 %v132_v18 }
  0x1b   :  { %122 = vmatpush.msra.mxu1 %v93_v12 }
  0x1c   :  { %157 = vmatpush.msra.mxu2 %v131_v23 }
  0x1d   :  { %123 = vmatpush.msra.mxu1 %v92_v13 }
  0x1e   :  { %158 = vmatpush.msra.mxu2 %v130_v24 }
  0x20   :  { %159 = vmatpush.msra.mxu2 %v129_v25 }
  0x92   :  { %v88_v20 = vpop.f32.mrf.mxu0 }
  0x93   :  { %v89_v21 = vadd.f32 %v199_v19, %v88_v20 }
  0x95   :  { %v91_v22 = vmax.f32 %v89_v21, 0.0 }
  0x97   :  { %192 = vmatmul.msk.f32.vlgmr.msra.gmra.mxu1 %vm104_vm1, %v91_v22 }
 0x114   :  { %v125_v27 = vpop.f32.mrf.mxu1 }
 0x115   :  { %v126_v28 = vadd.f32 %v200_v26, %v125_v27 }
 0x117   :  { %v128_v29 = vmax.f32 %v126_v28, 0.0 }
 0x119   :  { %193 = vmatmul.msk.f32.vlgmr.msra.gmra.mxu2 %vm104_vm1, %v128_v29 }
 0x19c   :  { %v161_v31 = vpop.f32.mrf.mxu2 }
 0x19d   :  { %v162_v32 = vadd.f32 %v201_v30, %v161_v31 }
 0x19f   :  { %v194_v33 = vmul.f32 -1.442695, %v162_v32 }
 0x1a1   :  { %202 = vpow2.f32 %v194_v33 }
 0x1a7   :  { %v203_v34 = vpop.eup %202 }
 0x1a8   :  { %v167_v35 = vadd.f32 1.0, %v203_v34 }
 0x1aa   :  { %204 = vrcp.f32 %v167_v35  ;;  %v179_v39 = vand.u32 2147483648, %v167_v35  ;;  %v177_v41 = vand.u32 2147483647, %v167_v35  ;;  %vm173_vm3 = vweird.f32 %v167_v35 }
 0x1ac   :  { %v180_v43 = vor.u32 1.1754944e-38, %v179_v39  ;;  %vm178_vm6 = vcmp.eq.f32.partialorder %v177_v41, 8.507059e+37 }
 0x1b0   :  { %v205_v36 = vpop.eup %204 }
 0x1b1   :  { %v169_v37 = vmul.f32 %v205_v36, %v167_v35  ;;  %vm174_vm2 = vweird.f32 %v205_v36 }
 0x1b2   :  { %vm175_vm4 = vmor %vm173_vm3, %vm174_vm2 }
 0x1b3   :  { %v170_v38 = vsub.f32 1.0, %v169_v37 }
 0x1b5   :  { %v171_v40 = vmul.f32 %v205_v36, %v170_v38 }
 0x1b7   :  { %v172_v42 = vadd.f32 %v205_v36, %v171_v40 }
 0x1b9   :  { %v176_v44 = vsel %vm175_vm4, %v205_v36, %v172_v42 }
 0x1ba   :  { %v181_v45 = vsel %vm178_vm6, %v180_v43, %v176_v44 }
 0x1bb   :  { %184 = vst.msk [vmem:[%s375_s7] sm:$0xff] %vm183_vm5, %v181_v45 }
 0x1bc   :  { %189 = vsyncpa [#allocation4], 1 }
 0x1bd   :  { %190 = vsyncpa [#allocation6], 1 }

</bundles_post_ra>
